<compile_context>
chip_gen: v7x
topology: tpu7x:2x2x1
jax: 0.10.0
libtpu: 0.0.40
codegen_flags: <defaults>
</compile_context>

<pallas_src>
import jax
import jax.numpy as jnp
from jax import lax
from jax.experimental import pallas as pl
from jax.experimental.pallas import tpu as pltpu


_VMEM_LIMIT = 32 * 1024 * 1024   # explicit scoped-VMEM budget (safe on v5e/v6e/v7x)


def _pick_block(dim, target, quantum):
    """Largest multiple of `quantum` <= target that divides dim; else full dim."""
    if dim <= target:
        return dim
    b = (target // quantum) * quantum
    while b >= quantum:
        if dim % b == 0:
            return b
        b -= quantum
    return dim


# ---------------------------------------------------------------------------
# Kernel 1: tiled dense linear  y = x @ W + b
#   x: (M, K), W stored pre-transposed as (K, N), b: (1, N)
# ---------------------------------------------------------------------------
def _linear_kernel(x_ref, w_ref, b_ref, o_ref, acc_ref):
    @pl.when(pl.program_id(2) == 0)
    def _init():
        acc_ref[...] = jnp.zeros_like(acc_ref)

    acc_ref[...] += jnp.dot(x_ref[...], w_ref[...],
                            preferred_element_type=jnp.float32)

    @pl.when(pl.program_id(2) == pl.num_programs(2) - 1)
    def _finalize():
        o_ref[...] = (acc_ref[...]
                      + b_ref[...].astype(jnp.float32)).astype(o_ref.dtype)


def pallas_linear(x, w_t, b2, *, tm=256, tn=256, tk=512):
    """x: (M, K), w_t: (K, N) (pre-transposed), b2: (1, N) -> (M, N)."""
    M, K = x.shape
    N = w_t.shape[1]
    bm = _pick_block(M, tm, 8)
    bn = _pick_block(N, tn, 128)
    bk = _pick_block(K, tk, 128)
    grid = (M // bm, N // bn, K // bk)
    return pl.pallas_call(
        _linear_kernel,
        out_shape=jax.ShapeDtypeStruct((M, N), x.dtype),
        grid_spec=pltpu.PrefetchScalarGridSpec(
            num_scalar_prefetch=0,
            grid=grid,
            in_specs=[
                pl.BlockSpec((bm, bk), lambda i, j, k: (i, k)),
                pl.BlockSpec((bk, bn), lambda i, j, k: (k, j)),
                pl.BlockSpec((1, bn), lambda i, j, k: (0, j)),
            ],
            out_specs=pl.BlockSpec((bm, bn), lambda i, j, k: (i, j)),
            scratch_shapes=[pltpu.VMEM((bm, bn), jnp.float32)],
        ),
        compiler_params=pltpu.CompilerParams(
            dimension_semantics=("parallel", "parallel", "arbitrary"),
            vmem_limit_bytes=_VMEM_LIMIT),
    )(x, w_t, b2)


# ---------------------------------------------------------------------------
# Kernel 2: multi-head attention, one grid step per batch element.
#   All H heads are processed per step via static channel slices of the dense
#   (N, C) blocks; the output is written back as one lane-dense (Nq, Cv) slab.
#   Softmax math in f32; matmul operands keep the input dtype (bf16 friendly),
#   accumulation in f32 via preferred_element_type.
# ---------------------------------------------------------------------------
def _make_attn_kernel(scale, num_heads, qk_head_dim, v_head_dim, has_bias):
    def kernel(*refs):
        if has_bias:
            q_ref, k_ref, v_ref, bias_ref, o_ref = refs
            bias = bias_ref[0].astype(jnp.float32)           # (Nq, Nk)
        else:
            q_ref, k_ref, v_ref, o_ref = refs
            bias = None

        q_all = q_ref[0]                                     # (Nq, Cq)
        k_all = k_ref[0]                                     # (Nk, Ck)
        v_all = v_ref[0]                                     # (Nk, Cv)

        outs = []
        for h in range(num_heads):
            q = q_all[:, h * qk_head_dim:(h + 1) * qk_head_dim]   # (Nq, hd)
            k = k_all[:, h * qk_head_dim:(h + 1) * qk_head_dim]   # (Nk, hd)
            v = v_all[:, h * v_head_dim:(h + 1) * v_head_dim]     # (Nk, hdv)

            # s = q @ k^T (contract head_dim) with f32 accumulation on the MXU.
            s = lax.dot_general(q, k, (((1,), (1,)), ((), ())),
                                preferred_element_type=jnp.float32) * scale
            if bias is not None:
                s = s + bias
            s = s - jnp.max(s, axis=-1, keepdims=True)
            p = jnp.exp(s)
            p = p * pl.reciprocal(jnp.sum(p, axis=-1, keepdims=True),
                                  approx=True)
            o = jnp.dot(p.astype(v.dtype), v,
                        preferred_element_type=jnp.float32)
            outs.append(o.astype(o_ref.dtype))

        # one lane-dense store of all heads
        o_ref[0] = jnp.concatenate(outs, axis=-1)
    return kernel


def pallas_attention(q, k, v, att_bias, num_heads, scale):
    """q: (B, Nq, Cq), k: (B, Nk, Ck), v: (B, Nk, Cv), att_bias: (B, Nq, Nk) or None."""
    B, Nq, Cq = q.shape
    _, Nk, Ck = k.shape
    Cv = v.shape[2]
    qk_hd = Cq // num_heads
    v_hd = Cv // num_heads

    has_bias = att_bias is not None
    kernel = _make_attn_kernel(scale, num_heads, qk_hd, v_hd, has_bias)

    in_specs = [
        pl.BlockSpec((1, Nq, Cq), lambda b: (b, 0, 0)),
        pl.BlockSpec((1, Nk, Ck), lambda b: (b, 0, 0)),
        pl.BlockSpec((1, Nk, Cv), lambda b: (b, 0, 0)),
    ]
    args = [q, k, v]
    if has_bias:
        in_specs.append(pl.BlockSpec((1, Nq, Nk), lambda b: (b, 0, 0)))
        args.append(att_bias)

    # TODO(synk): for very long key sequences, tile Nk with an online-softmax
    # (flash-style) inner loop instead of holding the full K/V rows per step.
    return pl.pallas_call(
        kernel,
        out_shape=jax.ShapeDtypeStruct((B, Nq, Cv), q.dtype),
        grid_spec=pltpu.PrefetchScalarGridSpec(
            num_scalar_prefetch=0,
            grid=(B,),
            in_specs=in_specs,
            out_specs=pl.BlockSpec((1, Nq, Cv), lambda b: (b, 0, 0)),
        ),
        compiler_params=pltpu.CompilerParams(
            dimension_semantics=("parallel",),
            vmem_limit_bytes=_VMEM_LIMIT),
    )(*args)


# ---------------------------------------------------------------------------
# Module wrapper (parameter setup; only free contiguous reshapes outside
# the kernels -- no transposes, no zero-bias materialization).
# ---------------------------------------------------------------------------
class LightAttModulePallas:
    def __init__(self, dim, num_heads, out_dim=None, qkv_bias=False,
                 qk_scale=None, q_project=True, k_project=True,
                 v_project=True, proj_after_att=True, key=None):
        if out_dim is None:
            out_dim = dim
        self.dim = dim
        self.out_dim = out_dim
        self.num_heads = num_heads
        head_dim = dim // num_heads
        self.scale = qk_scale or head_dim ** (-0.5)
        self.q_project = q_project
        self.k_project = k_project
        self.v_project = v_project
        self.proj_after_att = proj_after_att

        if key is None:
            key = jax.random.PRNGKey(0)
        keys = jax.random.split(key, 8)

        def init_w(k, n_in, n_out):
            # stored pre-transposed (in_features, out_features): the kernel
            # contracts x @ W directly, so no per-call weight transpose.
            return (jax.random.normal(k, (n_in, n_out), jnp.float32)
                    * (1.0 / jnp.sqrt(n_in)))

        self.wq = init_w(keys[0], dim, dim) if q_project else None
        self.wk = init_w(keys[1], dim, dim) if k_project else None
        self.wv = init_w(keys[2], dim, dim) if v_project else None
        if qkv_bias:
            self.bq = jax.random.normal(keys[3], (1, dim), jnp.float32) * 0.02
            self.bk = jax.random.normal(keys[4], (1, dim), jnp.float32) * 0.02
            self.bv = jax.random.normal(keys[5], (1, dim), jnp.float32) * 0.02
        else:
            self.bq = self.bk = self.bv = jnp.zeros((1, dim), jnp.float32)

        if proj_after_att:
            self.wo = init_w(keys[6], dim, out_dim)
            self.bo = jax.random.normal(keys[7], (1, out_dim), jnp.float32) * 0.02
        else:
            self.wo = self.bo = None

    def __call__(self, query, key, value, att_bias=None):
        bq, nq, cq = query.shape

        def maybe_proj(x, w, b):
            if w is None:
                return x
            B, N, C = x.shape
            y = pallas_linear(x.reshape(B * N, C), w, b)
            return y.reshape(B, N, -1)

        q = maybe_proj(query, self.wq, self.bq)
        k = maybe_proj(key, self.wk, self.bk)
        v = maybe_proj(value, self.wv, self.bv)

        out = pallas_attention(q, k, v, att_bias, self.num_heads, self.scale)

        if self.wo is not None:
            # TODO(synk): fuse this projection into the attention epilogue to
            # save one HBM round trip of the (B, Nq, C) attention output.
            out = pallas_linear(out.reshape(bq * nq, -1), self.wo,
                                self.bo).reshape(bq, nq, self.out_dim)
        return out


# ---------------------------------------------------------------------------
# Pure-JAX reference (for correctness check)
# ---------------------------------------------------------------------------
def reference_forward(mod, query, key, value, att_bias=None):
    H = mod.num_heads

    def lin(x, w, b):
        return x @ w + b if w is not None else x

    def split(x):
        B, N, C = x.shape
        return x.reshape(B, N, H, C // H).transpose(0, 2, 1, 3)

    q = split(lin(query, mod.wq, mod.bq))
    k = split(lin(key, mod.wk, mod.bk))
    v = split(lin(value, mod.wv, mod.bv))
    attn = jnp.einsum("bhnc,bhmc->bhnm", q, k) * mod.scale
    if att_bias is not None:
        attn = attn + att_bias[:, None, :, :]
    attn = jax.nn.softmax(attn, axis=-1)
    out = jnp.einsum("bhnm,bhmc->bhnc", attn, v)
    out = out.transpose(0, 2, 1, 3).reshape(query.shape[0], query.shape[1], -1)
    if mod.wo is not None:
        out = out @ mod.wo + mod.bo
    return out


if __name__ == "__main__":
    B, Nq, Nk, dim, heads = 2, 8, 16, 32, 4

    root = jax.random.PRNGKey(0)
    kq, kk, kv, kb, kp = jax.random.split(root, 5)
    query = jax.random.normal(kq, (B, Nq, dim), jnp.float32)
    key = jax.random.normal(kk, (B, Nk, dim), jnp.float32)
    value = jax.random.normal(kv, (B, Nk, dim), jnp.float32)
    att_bias = 0.1 * jax.random.normal(kb, (B, Nq, Nk), jnp.float32)

    mod = LightAttModulePallas(dim=dim, num_heads=heads, qkv_bias=False,
                               q_project=True, k_project=True, v_project=True,
                               proj_after_att=True, key=kp)

    # with bias
    out = jax.block_until_ready(mod(query, key, value, att_bias))
    ref = reference_forward(mod, query, key, value, att_bias)
    assert out.shape == (B, Nq, dim), out.shape
    err = float(jnp.max(jnp.abs(out - ref)))
    # approx reciprocal in the softmax denominator -> slightly looser tolerance
    assert err < 2e-2, err

    # bias-free path (separate compiled variant, no zeros tensor materialized)
    out_nb = jax.block_until_ready(mod(query, key, value, None))
    ref_nb = reference_forward(mod, query, key, value, None)
    err_nb = float(jnp.max(jnp.abs(out_nb - ref_nb)))
    assert err_nb < 2e-2, err_nb

    print("KERNEL_OK")
</pallas_src>

<mosaic_0001>
module attributes {stable_mosaic.version = 11 : i64} {
  func.func @_linear_kernel(%arg0: i32, %arg1: i32, %arg2: i32, %arg3: memref<16x32xf32, #tpu.memory_space<vmem>>, %arg4: memref<32x32xf32, #tpu.memory_space<vmem>>, %arg5: memref<1x32xf32, #tpu.memory_space<vmem>>, %arg6: memref<16x32xf32, #tpu.memory_space<vmem>>, %arg7: memref<16x32xf32, #tpu.memory_space<vmem>>) attributes {dimension_semantics = [#tpu.dimension_semantics<parallel>, #tpu.dimension_semantics<parallel>, #tpu.dimension_semantics<arbitrary>], iteration_bounds = array<i64: 1, 1, 1>, scalar_prefetch = 0 : i64, scratch_operands = 1 : i64, tpu.core_type = #tpu.core_type<tc>, window_params = [{transform_indices = @transform_0, window_bounds = array<i64: 16, 32>}, {transform_indices = @transform_1, window_bounds = array<i64: 32, 32>}, {transform_indices = @transform_2, window_bounds = array<i64: 1, 32>}, {transform_indices = @transform_3, window_bounds = array<i64: 16, 32>}]} {
    %c0_i32 = arith.constant 0 : i32
    %0 = arith.cmpi eq, %arg2, %c0_i32 : i32
    %1 = arith.extui %0 : i1 to i32
    %c0_i32_0 = arith.constant 0 : i32
    %2 = arith.cmpi ne, %1, %c0_i32_0 : i32
    scf.if %2 {
      %cst_10 = arith.constant 0.000000e+00 : f32
      %12 = vector.broadcast %cst_10 : f32 to vector<16x32xf32>
      %c0_11 = arith.constant 0 : index
      %c0_12 = arith.constant 0 : index
      %13 = vector.load %arg7[%c0_11, %c0_12] : memref<16x32xf32, #tpu.memory_space<vmem>>, vector<16x32xf32>
      tpu.vector_store %arg7[%c0_11, %c0_12], %12 {strides = array<i32>} : memref<16x32xf32, #tpu.memory_space<vmem>>, vector<16x32xf32>,
    } else {
    }
    %c0 = arith.constant 0 : index
    %c0_1 = arith.constant 0 : index
    %3 = vector.load %arg7[%c0, %c0_1] : memref<16x32xf32, #tpu.memory_space<vmem>>, vector<16x32xf32>
    %c0_2 = arith.constant 0 : index
    %c0_3 = arith.constant 0 : index
    %4 = vector.load %arg3[%c0_2, %c0_3] : memref<16x32xf32, #tpu.memory_space<vmem>>, vector<16x32xf32>
    %c0_4 = arith.constant 0 : index
    %c0_5 = arith.constant 0 : index
    %5 = vector.load %arg4[%c0_4, %c0_5] : memref<32x32xf32, #tpu.memory_space<vmem>>, vector<32x32xf32>
    %cst = arith.constant dense<0.000000e+00> : vector<16x32xf32>
    %6 = tpu.matmul %4, %5, %cst {dimension_numbers = #tpu.dot_dimension_numbers<[1], [0], [0], [1], [0, 0, 1, 1], [], []>} : vector<16x32xf32>, vector<32x32xf32>, vector<16x32xf32> -> vector<16x32xf32>
    %7 = arith.addf %3, %6 : vector<16x32xf32>
    %c0_6 = arith.constant 0 : index
    %c0_7 = arith.constant 0 : index
    %8 = vector.load %arg7[%c0_6, %c0_7] : memref<16x32xf32, #tpu.memory_space<vmem>>, vector<16x32xf32>
    tpu.vector_store %arg7[%c0_6, %c0_7], %7 {strides = array<i32>} : memref<16x32xf32, #tpu.memory_space<vmem>>, vector<16x32xf32>,
    %c0_i32_8 = arith.constant 0 : i32
    %9 = arith.cmpi eq, %arg2, %c0_i32_8 : i32
    %10 = arith.extui %9 : i1 to i32
    %c0_i32_9 = arith.constant 0 : i32
    %11 = arith.cmpi ne, %10, %c0_i32_9 : i32
    scf.if %11 {
      %c0_10 = arith.constant 0 : index
      %c0_11 = arith.constant 0 : index
      %12 = vector.load %arg7[%c0_10, %c0_11] : memref<16x32xf32, #tpu.memory_space<vmem>>, vector<16x32xf32>
      %c0_12 = arith.constant 0 : index
      %c0_13 = arith.constant 0 : index
      %13 = vector.load %arg5[%c0_12, %c0_13] : memref<1x32xf32, #tpu.memory_space<vmem>>, vector<1x32xf32>
      %14 = vector.broadcast %13 : vector<1x32xf32> to vector<16x32xf32>
      %15 = arith.addf %12, %14 : vector<16x32xf32>
      %c0_14 = arith.constant 0 : index
      %c0_15 = arith.constant 0 : index
      %16 = vector.load %arg6[%c0_14, %c0_15] : memref<16x32xf32, #tpu.memory_space<vmem>>, vector<16x32xf32>
      tpu.vector_store %arg6[%c0_14, %c0_15], %15 {strides = array<i32>} : memref<16x32xf32, #tpu.memory_space<vmem>>, vector<16x32xf32>,
    } else {
    }
    return
  }
  func.func @transform_0(%arg0: i32, %arg1: i32, %arg2: i32) -> (i32, i32) {
    %c0_i32 = arith.constant 0 : i32
    return %arg0, %arg2 : i32, i32
  }
  func.func @transform_1(%arg0: i32, %arg1: i32, %arg2: i32) -> (i32, i32) {
    %c0_i32 = arith.constant 0 : i32
    return %arg2, %arg1 : i32, i32
  }
  func.func @transform_2(%arg0: i32, %arg1: i32, %arg2: i32) -> (i32, i32) {
    %c0_i32 = arith.constant 0 : i32
    %c0_i32_0 = arith.constant 0 : i32
    return %c0_i32, %arg1 : i32, i32
  }
  func.func @transform_3(%arg0: i32, %arg1: i32, %arg2: i32) -> (i32, i32) {
    %c0_i32 = arith.constant 0 : i32
    return %arg0, %arg1 : i32, i32
  }
}

</mosaic_0001>

<bundles_post_ra>
// kernel: tpu_custom_call.1
= control target key start
LH: loop header
LB: loop body
LE: loop exit
PB: predicated region body
PF: predicated region fallthrough
CT: control target
= control target key end

     0   :  { %8 = vsyncpa [#allocation4], 0  ;;  %s366_s0 = inlined_call_operand.hbm [shape: f32[16,32], index: 0, kind: input, shape index: {}]   ;;  %s367_s1 = inlined_call_operand.hbm [shape: f32[32,32], index: 1, kind: input, shape index: {}]   ;;  %s368_s2 = inlined_call_operand.vmem [shape: f32[1,32], index: 2, kind: input, shape index: {}]   ;;  %s369_s3 = inlined_call_operand.hbm [shape: f32[16,32], index: 3, kind: output, shape index: {}]  }
   0x1   :  { %9 = vsyncpa [#allocation7], 0 }
   0x2   :  { %10 = vsyncpa [#allocation5], 0  ;;  %s284_s12 = smov [#allocation3]   ;;  %s212_s16 = scalar_lea.hbm %s366_s0, 256 }
   0x3   :  { %s16_s13 = sshll.u32 %s284_s12, 4  ;;  %p213_p0 = scmp.ne.s32.totalorder %s366_s0, %s212_s16  ;;  %s17_s13 = int_to_ptr.vmem [resolvable:$true] %s16_s13 }
   0x4   :  { %p216_p1 = scmp.lt.u32.totalorder %s212_s16, %s366_s0 }
   0x6   :  { %p218_p2 = pnand %p216_p1, %p213_p0 }
   0x8   :  { %221 = shalt.err (!%p218_p2)
}
   0x9   :  { %s222_s21 = scalar_lea.vmem %s17_s13, 256  ;;  %p227_p4 = scmp.lt.s32.totalorder %s17_s13, %s17_s13 }
   0xa   :  { %p223_p3 = scmp.ne.s32.totalorder %s17_s13, %s222_s21  ;;  %p228_p5 = scmp.lt.s32.totalorder %s222_s21, %s222_s21 }
   0xc   :  { %p229_p6 = por %p228_p5, %p227_p4 }
   0xe   :  { %p230_p7 = pnand %p229_p6, %p223_p3 }
  0x10   :  { %233 = shalt.err (!%p230_p7)
}
  0x11   :  { %s285_s22 = smov 128   ;;  %s286_s23 = smov 8  }
  0x12   :  { %22 = dma.hbm_to_vmem [thread:$0]  %s366_s0, 256, %s17_s13, [#allocation4], %s285_s22, %s285_s22, %s286_s23  }
  0x13   :  { %s287_s26 = smov [#allocation6]   ;;  %s234_s30 = scalar_lea.hbm %s367_s1, 512 }
  0x14   :  { %s28_s27 = sshll.u32 %s287_s26, 4  ;;  %p235_p8 = scmp.ne.s32.totalorder %s367_s1, %s234_s30  ;;  %s29_s27 = int_to_ptr.vmem [resolvable:$true] %s28_s27 }
  0x15   :  { %p238_p9 = scmp.lt.u32.totalorder %s234_s30, %s367_s1 }
  0x17   :  { %p240_p10 = pnand %p238_p9, %p235_p8 }
  0x19   :  { %243 = shalt.err (!%p240_p10)
}
  0x1a   :  { %s244_s8 = scalar_lea.vmem %s29_s27, 512  ;;  %p249_p12 = scmp.lt.s32.totalorder %s29_s27, %s29_s27 }
  0x1b   :  { %p245_p11 = scmp.ne.s32.totalorder %s29_s27, %s244_s8  ;;  %p250_p13 = scmp.lt.s32.totalorder %s244_s8, %s244_s8 }
  0x1d   :  { %p251_p0 = por %p250_p13, %p249_p12 }
  0x1f   :  { %p252_p1 = pnand %p251_p0, %p245_p11 }
  0x21   :  { %255 = shalt.err (!%p252_p1)
}
  0x22   :  { %34 = dma.hbm_to_vmem [thread:$0]  %s367_s1, 512, %s29_s27, [#allocation7], %s285_s22, %s285_s22, %s286_s23  }
  0x23   :  { %278 = dma.done.wait [#allocation4], 256  }
  0x24   :  { %279 = vsyncadd [#allocation4], 4294967040 }
  0x25   :  { %280 = dma.done.wait [#allocation7], 512  }
  0x26   :  { %281 = vsyncadd [#allocation7], 4294966784  ;;  %vm47_vm0 = vcmask 261120   ;;  %v288_v0 = vmov 0.0   ;;  %v54_v1 = vld [vmem:[#allocation6] sm:$0xff]  ;;  %v55_v2 = vld [vmem:[#allocation6 + $0x8] sm:$0xff] }
  0x27   :  { %49 = vst.msk [vmem:[#allocation2 + $0x8] sm:$0xff] %vm47_vm0, %v288_v0  ;;  %48 = vst.msk [vmem:[#allocation2] sm:$0xff] %vm47_vm0, %v288_v0  ;;  %v56_v3 = vld [vmem:[#allocation6 + $0x10] sm:$0xff]  ;;  %v198_v4 = vpack.c.bf16 %v55_v2, %v54_v1  ;;  %v57_v5 = vld [vmem:[#allocation6 + $0x18] sm:$0xff]  ;;  %s289_s11 = smov [#allocation8]  }
  0x28   :  { %v52_v6 = vld [vmem:[#allocation3] sm:$0xff]  ;;  %v202_v7 = vpack.c.bf16 %v57_v5, %v56_v3  ;;  %v53_v8 = vld [vmem:[#allocation3 + $0x8] sm:$0xff]  ;;  %v180_v15 = vld [vmem:[%s368_s2] ss:$0 sm:$0xff]  ;;  %s165_s12 = sshll.u32 %s289_s11, 4  ;;  %s166_s12 = int_to_ptr.vmem [resolvable:$true] %s165_s12 }
  0x29   :  { %195 = vmatprep.mubr.msk.f32.mxu0 %vm47_vm0, %v52_v6  ;;  %199 = vmatprep.subr.bf16.mxu0 %v198_v4  ;;  %s256_s13 = scalar_lea.vmem %s166_s12, 256  ;;  %p261_p3 = scmp.lt.s32.totalorder %s166_s12, %s166_s12 }
  0x2a   :  { %201 = vmatpush3.bf16.msra.mxu0 %v198_v4  ;;  %p257_p2 = scmp.ne.s32.totalorder %s166_s12, %s256_s13  ;;  %p262_p4 = scmp.lt.s32.totalorder %s256_s13, %s256_s13 }
  0x2b   :  { %203 = vmatprep.subr.bf16.mxu0 %v202_v7 }
  0x2c   :  { %p263_p5 = por %p262_p4, %p261_p3 }
  0x2e   :  { %205 = vmatpush3.bf16.msra.mxu0 %v202_v7  ;;  %v51_v9 = vld [vmem:[#allocation2 + $0x8] sm:$0xff]  ;;  %v50_v10 = vld [vmem:[#allocation2] sm:$0xff]  ;;  %p264_p6 = pnand %p263_p5, %p257_p2 }
  0x31   :  { %196 = vmatmul.mubr.msk.f32.vlgmr.msra.gmra.mrb[0].mxu0 %vm47_vm0, %v53_v8 }
 0x104   :  { %v197_v11 = vpop.f32.mrb[0].mxu0 }
 0x105   :  { %v141_v12 = vadd.f32 %v197_v11, %v51_v9  ;;  %v131_v13 = vpop.f32.mrb[1].mxu0 }
 0x106   :  { %v140_v14 = vadd.f32 %v131_v13, %v50_v10 }
 0x107   :  { %143 = vst.msk [vmem:[#allocation2 + $0x8] sm:$0xff] %vm47_vm0, %v141_v12 }
 0x108   :  { %142 = vst.msk [vmem:[#allocation2] sm:$0xff] %vm47_vm0, %v140_v14 }
 0x10e   :  { %v148_v16 = vld [vmem:[#allocation2 + $0x8] sm:$0xff] }
 0x10f   :  { %v147_v17 = vld [vmem:[#allocation2] sm:$0xff]  ;;  %v157_v18 = vadd.f32 %v180_v15, %v148_v16 }
 0x110   :  { %v156_v19 = vadd.f32 %v180_v15, %v147_v17 }
 0x111   :  { %159 = vst.msk [vmem:[#allocation8 + $0x8] sm:$0xff] %vm47_vm0, %v157_v18 }
 0x112   :  { %158 = vst.msk [vmem:[#allocation8] sm:$0xff] %vm47_vm0, %v156_v19 }
 0x113   :  { %267 = shalt.err (!%p264_p6)
}
 0x114   :  { %s268_s15 = scalar_lea.hbm %s369_s3, 256 }
 0x115   :  { %p269_p7 = scmp.ne.s32.totalorder %s369_s3, %s268_s15  ;;  %p272_p8 = scmp.lt.u32.totalorder %s268_s15, %s369_s3 }
 0x117   :  { %p274_p9 = pnand %p272_p8, %p269_p7 }
 0x119   :  { %277 = shalt.err (!%p274_p9)
}
 0x11a   :  { %171 = dma.vmem_to_hbm [thread:$0]  %s166_s12, 256, %s369_s3, [#allocation5], %s285_s22, %s285_s22, %s286_s23  }
 0x11b   :  { %282 = dma.done.wait [#allocation5], 256  }
 0x11c   :  { %283 = vsyncadd [#allocation5], 4294967040 }
 0x11d   :  { %175 = vsyncpa [#allocation4], 1 }
 0x11e   :  { %176 = vsyncpa [#allocation7], 1 }
 0x11f   :  { %177 = vsyncpa [#allocation5], 1 }

</bundles_post_ra>
